<compile_context>
chip_gen: v5e
topology: v5e:2x2
jax: 0.10.0
libtpu: 0.0.40
codegen_flags: <defaults>
</compile_context>

<pallas_src>
import functools

import jax
import jax.numpy as jnp
from jax import lax
from jax.experimental import pallas as pl
from jax.experimental.pallas import tpu as pltpu

_MS_EPSILON = 0.1        # MultiSimilarityMiner default epsilon
_TRIPLET_MARGIN = 0.05   # TripletMarginLoss default margin
_BIG = 1e30              # finite stand-in for +/-inf in the VPU mining reductions
_D_SENT = 8.0            # bf16-exact sentinel for unmined distances (d in [0,2])
_NORM_EPS_SQ = 1e-24     # (1e-12)^2, matches F.normalize eps


def _partials_kernel(out1_ref, center_ref, outp_ref, tgt_ref, sel_ref, part_ref, *, bm, n):
    """One anchor block: emits 5 partial scalars packed into a lane-dense (8, 128) slab."""
    row0 = pl.multiple_of(pl.program_id(0) * bm, 8)

    c = center_ref[...].astype(jnp.float32)                      # (1, D)
    x_full = out1_ref[...].astype(jnp.float32) - c               # (n, D)  all samples
    t_full = tgt_ref[...].astype(jnp.float32)                    # (n, 1)

    # Anchor block rows sliced from the resident full arrays (sublane-aligned pl.ds).
    x_blk = out1_ref[pl.ds(row0, bm), :].astype(jnp.float32) - c  # (bm, D)
    t_blk = tgt_ref[pl.ds(row0, bm), :].astype(jnp.float32)       # (bm, 1)
    logit = outp_ref[pl.ds(row0, bm), :].astype(jnp.float32)      # (bm, 1)

    # ---------- centerloss pieces: sum / count over rows with target == 0 ----------
    sq_blk = jnp.sum(x_blk * x_blk, axis=1, keepdims=True)        # (bm, 1)
    zero_row = jnp.where(t_blk == 0.0, 1.0, 0.0)
    c_num = jnp.sum(sq_blk * zero_row)
    c_cnt = jnp.sum(zero_row)
    # NOTE: if no row has target==0 the final division is NaN, matching torch semantics.

    # ---------- cosine similarity, transposed block: cosT[j, a] = cos(anchor a, sample j)
    # single bf16 MXU pass with f32 accumulation.
    sq_full = jnp.sum(x_full * x_full, axis=1, keepdims=True)
    xn_blk = (x_blk * lax.rsqrt(jnp.maximum(sq_blk, _NORM_EPS_SQ))).astype(jnp.bfloat16)
    xn_full = (x_full * lax.rsqrt(jnp.maximum(sq_full, _NORM_EPS_SQ))).astype(jnp.bfloat16)
    cosT = lax.dot_general(xn_full, xn_blk, (((1,), (1,)), ((), ())),
                           preferred_element_type=jnp.float32)    # (n, bm)

    # ---------- label-equality mask via ONE K=2 contraction (binary labels) ----------
    lane2_blk = lax.broadcasted_iota(jnp.int32, (bm, 2), 1)
    lane2_full = lax.broadcasted_iota(jnp.int32, (n, 2), 1)
    tc_blk = jnp.where(lane2_blk == 0, t_blk, 1.0 - t_blk)        # (bm, 2) = [t, 1-t]
    tc_full = jnp.where(lane2_full == 0, t_full, 1.0 - t_full)    # (n, 2)
    sameT = lax.dot_general(tc_full, tc_blk, (((1,), (1,)), ((), ())),
                            preferred_element_type=jnp.float32)   # (n, bm): 1 iff same label

    iota_j = lax.broadcasted_iota(jnp.int32, (n, bm), 0)
    iota_a = lax.broadcasted_iota(jnp.int32, (n, bm), 1)
    off_diag = jnp.where(iota_j == iota_a + row0, 0.0, 1.0)       # exclude j == anchor
    posT = sameT * off_diag                                        # positive pairs
    negT = 1.0 - sameT                                             # negative pairs

    # ---------- MultiSimilarityMiner hard-pair masks (per-anchor sublane reductions) ----
    max_neg = jnp.max(jnp.where(negT > 0.0, cosT, -_BIG), axis=0, keepdims=True)  # (1, bm)
    min_pos = jnp.min(jnp.where(posT > 0.0, cosT, _BIG), axis=0, keepdims=True)   # (1, bm)
    hpT = posT * jnp.where(cosT - _MS_EPSILON < max_neg, 1.0, 0.0)   # (n, bm)
    hnT = negT * jnp.where(cosT + _MS_EPSILON > min_pos, 1.0, 0.0)   # (n, bm)

    # ---------- TripletMarginLoss over all (anchor, hard-pos, hard-neg), vectorized ------
    dT = jnp.sqrt(jnp.maximum(2.0 - 2.0 * cosT, 0.0))             # L2 dist of normalized emb.
    # Fold the mined-pair masks into the distances with bf16-exact sentinels: unmined
    # pairs get +/-8.0 so the hinge term is exactly 0 and never counted.
    d_pos = jnp.where(hpT > 0.0, dT, -_D_SENT)                    # (n, bm)
    d_neg = jnp.where(hnT > 0.0, dT, _D_SENT)                     # (n, bm)
    d_stack = jnp.concatenate([d_pos, d_neg], axis=0).astype(jnp.bfloat16)  # (2n, bm)
    # Single fused selection matmul: sel = [rep | -til] (grid-invariant, resident input),
    # default-precision bf16 pass -> diff[j*n+k, a] = d_pos[j, a] - d_neg[k, a].
    diff = lax.dot_general(sel_ref[...], d_stack, (((1,), (0,)), ((), ())),
                           preferred_element_type=jnp.float32)    # (n*n, bm)
    viol = jnp.maximum(diff + _TRIPLET_MARGIN, 0.0)               # (n*n, bm)
    trip_sum = jnp.sum(viol)
    trip_cnt = jnp.sum(jnp.where(viol > 0.0, 1.0, 0.0))
    # TODO(synk): at production N, chunk this (n*n, bm) block with lax.fori_loop to bound
    # VMEM (v7x has 64 MiB) and overlap MXU drain with the relu/sum of the previous chunk.

    # ---------- BCEWithLogits (sum; divided by N outside) ----------
    bce_sum = jnp.sum(jnp.maximum(logit, 0.0) - logit * t_blk
                      + jnp.log1p(jnp.exp(-jnp.abs(logit))))

    # ---------- pack 5 block-level partial scalars into a lane-dense (8, 128) slab -------
    row = lax.broadcasted_iota(jnp.int32, (8, 128), 0)
    slab = (jnp.where(row == 0, c_num, 0.0)
            + jnp.where(row == 1, c_cnt, 0.0)
            + jnp.where(row == 2, trip_sum, 0.0)
            + jnp.where(row == 3, trip_cnt, 0.0)
            + jnp.where(row == 4, bce_sum, 0.0))
    part_ref[...] = slab


def triplet_loss_forward(out_1, center, out_p_1, target, *, block_m=None):
    """out_1: (N, D), center: (D,) or (1, D), out_p_1: (N, 1), target: (N, 1) float {0,1}."""
    n, dim = out_1.shape
    if block_m is None:
        block_m = min(n, 128)     # lane-dense anchor block; single grid step at small N
    assert n % block_m == 0 and block_m % 8 == 0, (
        "TODO(synk): pad N to a multiple of the anchor block size for ragged batches")
    num_blocks = n // block_m

    center2d = jnp.reshape(center, (1, dim))
    out_p_1 = jnp.reshape(out_p_1, (n, 1))
    target = jnp.reshape(target, (n, 1))

    # Grid-invariant fused selection matrix S = [rep | -til], shape (n*n, 2n), values in
    # {-1, 0, +1} (bf16-exact). Built once here and kept resident in VMEM; row j*n+k has
    # +1 at column j (picks d_pos[j]) and -1 at column n+k (picks d_neg[k]).
    rr = jnp.arange(n * n)
    jj = rr // n
    kk = rr - jj * n
    cols = jnp.arange(2 * n)
    sel = ((cols[None, :] == jj[:, None]).astype(jnp.float32)
           - (cols[None, :] == (kk[:, None] + n)).astype(jnp.float32)).astype(jnp.bfloat16)

    kernel = functools.partial(_partials_kernel, bm=block_m, n=n)
    parts = pl.pallas_call(
        kernel,
        grid=(num_blocks,),
        in_specs=[
            pl.BlockSpec((n, dim), lambda i: (0, 0)),        # full embeddings (resident)
            pl.BlockSpec((1, dim), lambda i: (0, 0)),        # center
            pl.BlockSpec((n, 1), lambda i: (0, 0)),          # full logits (resident)
            pl.BlockSpec((n, 1), lambda i: (0, 0)),          # full targets (resident)
            pl.BlockSpec((n * n, 2 * n), lambda i: (0, 0)),  # fused selection matrix
        ],
        out_specs=pl.BlockSpec((8, 128), lambda i: (i, 0)),  # lane-dense partials slab
        out_shape=jax.ShapeDtypeStruct((num_blocks * 8, 128), jnp.float32),
        compiler_params=pltpu.CompilerParams(
            dimension_semantics=("parallel",),               # shards blocks across TCs on v7x
            vmem_limit_bytes=32 * 1024 * 1024),
    )(out_1, center2d, out_p_1, target, sel)

    # Tiny second pass: combine the per-block partials into the final scalar loss.
    s = jnp.sum(parts[:, 0].reshape(num_blocks, 8), axis=0)
    center_loss = s[0] / s[1]                                 # NaN if no target==0 rows (torch)
    triplet = jnp.where(s[3] > 0.0, s[2] / jnp.maximum(s[3], 1.0), 0.0)
    bce = s[4] / jnp.float32(n)
    return center_loss + triplet + bce


def _reference(out_1, center, out_p_1, target):
    """Pure-JAX reference with identical math (sanity check)."""
    x = out_1.astype(jnp.float32) - jnp.reshape(center, (1, -1)).astype(jnp.float32)
    t = jnp.reshape(target, (-1, 1)).astype(jnp.float32)
    lbl = t[:, 0]
    n = x.shape[0]
    sq = jnp.sum(x * x, axis=1)
    zerorows = (lbl == 0.0)
    center_loss = jnp.sum(jnp.where(zerorows, sq, 0.0)) / jnp.sum(zerorows.astype(jnp.float32))

    xn = x / jnp.maximum(jnp.linalg.norm(x, axis=1, keepdims=True), 1e-12)
    # Mirror the kernel's single-pass bf16 cosine matmul and the bf16 rounding of the
    # distances fed to the fused bf16 selection matmul (near-tie sensitivity acknowledged).
    xnb = xn.astype(jnp.bfloat16)
    cos = jnp.matmul(xnb, xnb.T, preferred_element_type=jnp.float32)
    same = (lbl[:, None] == lbl[None, :])
    eye = jnp.eye(n, dtype=bool)
    pos = same & ~eye
    neg = ~same
    max_neg = jnp.max(jnp.where(neg, cos, -_BIG), axis=1, keepdims=True)
    min_pos = jnp.min(jnp.where(pos, cos, _BIG), axis=1, keepdims=True)
    hp = pos & (cos - _MS_EPSILON < max_neg)
    hn = neg & (cos + _MS_EPSILON > min_pos)
    dmat = jnp.sqrt(jnp.maximum(2.0 - 2.0 * cos, 0.0)).astype(jnp.bfloat16).astype(jnp.float32)
    viol = jnp.maximum(dmat[:, :, None] - dmat[:, None, :] + _TRIPLET_MARGIN, 0.0)
    valid = hp[:, :, None] & hn[:, None, :]
    l = jnp.where(valid, viol, 0.0)
    nnz = jnp.sum((l > 0.0).astype(jnp.float32))
    trip = jnp.where(nnz > 0.0, jnp.sum(l) / jnp.maximum(nnz, 1.0), 0.0)

    logits = jnp.reshape(out_p_1, (-1, 1)).astype(jnp.float32)
    bce = jnp.mean(jnp.maximum(logits, 0.0) - logits * t
                   + jnp.log1p(jnp.exp(-jnp.abs(logits))))
    return center_loss + trip + bce


if __name__ == "__main__":
    key = jax.random.PRNGKey(0)
    k1, k2, k3 = jax.random.split(key, 3)
    N, D = 16, 32
    out_1 = jax.random.normal(k1, (N, D), dtype=jnp.float32)
    center = 0.1 * jax.random.normal(k2, (D,), dtype=jnp.float32)
    out_p_1 = jax.random.normal(k3, (N, 1), dtype=jnp.float32)
    # binary targets with both classes present (and at least one 0 for the masked centerloss)
    target = jnp.array([0., 1., 0., 1., 0., 1., 1., 0.,
                        1., 0., 0., 1., 1., 0., 1., 0.], dtype=jnp.float32).reshape(N, 1)

    loss = jax.block_until_ready(triplet_loss_forward(out_1, center, out_p_1, target))
    ref = _reference(out_1, center, out_p_1, target)
    assert bool(jnp.isfinite(loss)), loss
    assert bool(jnp.allclose(loss, ref, rtol=2e-3, atol=2e-3)), (loss, ref)
    print("KERNEL_OK")
</pallas_src>

<mosaic_0001>
module attributes {stable_mosaic.version = 11 : i64} {
  func.func @_partials_kernel(%arg0: i32, %arg1: memref<16x32xf32, #tpu.memory_space<vmem>>, %arg2: memref<1x32xf32, #tpu.memory_space<vmem>>, %arg3: memref<16x1xf32, #tpu.memory_space<vmem>>, %arg4: memref<16x1xf32, #tpu.memory_space<vmem>>, %arg5: memref<256x32xbf16, #tpu.memory_space<vmem>>, %arg6: memref<8x128xf32, #tpu.memory_space<vmem>>) attributes {dimension_semantics = [#tpu.dimension_semantics<parallel>], iteration_bounds = array<i64: 1>, scalar_prefetch = 0 : i64, scratch_operands = 0 : i64, tpu.core_type = #tpu.core_type<tc>, window_params = [{pipeline_mode = #tpu.pipeline_mode<synchronous>, transform_indices = @transform_0, window_bounds = array<i64: 16, 32>}, {pipeline_mode = #tpu.pipeline_mode<synchronous>, transform_indices = @transform_1, window_bounds = array<i64: 1, 32>}, {pipeline_mode = #tpu.pipeline_mode<synchronous>, transform_indices = @transform_2, window_bounds = array<i64: 16, 1>}, {pipeline_mode = #tpu.pipeline_mode<synchronous>, transform_indices = @transform_3, window_bounds = array<i64: 16, 1>}, {pipeline_mode = #tpu.pipeline_mode<synchronous>, transform_indices = @transform_4, window_bounds = array<i64: 256, 32>}, {transform_indices = @transform_5, window_bounds = array<i64: 8, 128>}]} {
    %c16_i32 = arith.constant 16 : i32
    %0 = arith.muli %arg0, %c16_i32 : i32
    %1 = tpu.assume_multiple %0, 8 : i32
    %c0 = arith.constant 0 : index
    %c0_0 = arith.constant 0 : index
    %2 = vector.load %arg2[%c0, %c0_0] : memref<1x32xf32, #tpu.memory_space<vmem>>, vector<1x32xf32>
    %c0_1 = arith.constant 0 : index
    %c0_2 = arith.constant 0 : index
    %3 = vector.load %arg1[%c0_1, %c0_2] : memref<16x32xf32, #tpu.memory_space<vmem>>, vector<16x32xf32>
    %4 = vector.broadcast %2 : vector<1x32xf32> to vector<16x32xf32>
    %5 = arith.subf %3, %4 : vector<16x32xf32>
    %c0_3 = arith.constant 0 : index
    %c0_4 = arith.constant 0 : index
    %6 = vector.load %arg4[%c0_3, %c0_4] : memref<16x1xf32, #tpu.memory_space<vmem>>, vector<16x1xf32>
    %7 = arith.index_cast %1 : i32 to index
    %c0_5 = arith.constant 0 : index
    %8 = vector.load %arg1[%7, %c0_5] : memref<16x32xf32, #tpu.memory_space<vmem>>, vector<16x32xf32>
    %9 = vector.broadcast %2 : vector<1x32xf32> to vector<16x32xf32>
    %10 = arith.subf %8, %9 : vector<16x32xf32>
    %11 = arith.index_cast %1 : i32 to index
    %c0_6 = arith.constant 0 : index
    %12 = vector.load %arg4[%11, %c0_6] : memref<16x1xf32, #tpu.memory_space<vmem>>, vector<16x1xf32>
    %13 = arith.index_cast %1 : i32 to index
    %c0_7 = arith.constant 0 : index
    %14 = vector.load %arg3[%13, %c0_7] : memref<16x1xf32, #tpu.memory_space<vmem>>, vector<16x1xf32>
    %15 = arith.mulf %10, %10 : vector<16x32xf32>
    %cst = arith.constant dense<0.000000e+00> : vector<16xf32>
    %16 = vector.multi_reduction <add>, %15, %cst [1] : vector<16x32xf32> to vector<16xf32>
    %17 = vector.shape_cast %16 : vector<16xf32> to vector<16x1xf32>
    %cst_8 = arith.constant 0.000000e+00 : f32
    %18 = vector.broadcast %cst_8 : f32 to vector<16x1xf32>
    %19 = arith.cmpf oeq, %12, %18 : vector<16x1xf32>
    %cst_9 = arith.constant 1.000000e+00 : f32
    %cst_10 = arith.constant 0.000000e+00 : f32
    %20 = vector.broadcast %cst_9 : f32 to vector<16x1xf32>
    %21 = vector.broadcast %cst_10 : f32 to vector<16x1xf32>
    %22 = arith.select %19, %20, %21 : vector<16x1xi1>, vector<16x1xf32>
    %23 = arith.mulf %17, %22 : vector<16x1xf32>
    %24 = vector.shape_cast %23 : vector<16x1xf32> to vector<1x16x1xf32>
    %cst_11 = arith.constant dense<0.000000e+00> : vector<1xf32>
    %25 = vector.multi_reduction <add>, %24, %cst_11 [1, 2] : vector<1x16x1xf32> to vector<1xf32>
    %26 = vector.shape_cast %25 : vector<1xf32> to vector<1x1x1xf32>
    %27 = vector.extract %26[0, 0, 0] : f32 from vector<1x1x1xf32>
    %28 = vector.shape_cast %22 : vector<16x1xf32> to vector<1x16x1xf32>
    %cst_12 = arith.constant dense<0.000000e+00> : vector<1xf32>
    %29 = vector.multi_reduction <add>, %28, %cst_12 [1, 2] : vector<1x16x1xf32> to vector<1xf32>
    %30 = vector.shape_cast %29 : vector<1xf32> to vector<1x1x1xf32>
    %31 = vector.extract %30[0, 0, 0] : f32 from vector<1x1x1xf32>
    %32 = arith.mulf %5, %5 : vector<16x32xf32>
    %cst_13 = arith.constant dense<0.000000e+00> : vector<16xf32>
    %33 = vector.multi_reduction <add>, %32, %cst_13 [1] : vector<16x32xf32> to vector<16xf32>
    %34 = vector.shape_cast %33 : vector<16xf32> to vector<16x1xf32>
    %cst_14 = arith.constant 1.000000e-24 : f32
    %35 = vector.broadcast %cst_14 : f32 to vector<16x1xf32>
    %36 = arith.maximumf %17, %35 : vector<16x1xf32>
    %37 = math.rsqrt %36 : vector<16x1xf32>
    %38 = vector.broadcast %37 : vector<16x1xf32> to vector<16x32xf32>
    %39 = arith.mulf %10, %38 : vector<16x32xf32>
    %40 = arith.truncf %39 : vector<16x32xf32> to vector<16x32xbf16>
    %cst_15 = arith.constant 1.000000e-24 : f32
    %41 = vector.broadcast %cst_15 : f32 to vector<16x1xf32>
    %42 = arith.maximumf %34, %41 : vector<16x1xf32>
    %43 = math.rsqrt %42 : vector<16x1xf32>
    %44 = vector.broadcast %43 : vector<16x1xf32> to vector<16x32xf32>
    %45 = arith.mulf %5, %44 : vector<16x32xf32>
    %46 = arith.truncf %45 : vector<16x32xf32> to vector<16x32xbf16>
    %cst_16 = arith.constant dense<0.000000e+00> : vector<16x16xf32>
    %47 = tpu.matmul %46, %40, %cst_16 {dimension_numbers = #tpu.dot_dimension_numbers<[1], [1], [0], [0], [0, 0, 1, 0], [], []>} : vector<16x32xbf16>, vector<16x32xbf16>, vector<16x16xf32> -> vector<16x16xf32>
    %48 = tpu.iota {dimensions = array<i32: 1>} : vector<16x2xi32>
    %49 = tpu.iota {dimensions = array<i32: 1>} : vector<16x2xi32>
    %c0_i32 = arith.constant 0 : i32
    %50 = vector.broadcast %c0_i32 : i32 to vector<16x2xi32>
    %51 = arith.cmpi eq, %48, %50 : vector<16x2xi32>
    %cst_17 = arith.constant 1.000000e+00 : f32
    %52 = vector.broadcast %cst_17 : f32 to vector<16x1xf32>
    %53 = arith.subf %52, %12 : vector<16x1xf32>
    %54 = vector.shape_cast %12 : vector<16x1xf32> to vector<16x1xf32>
    %55 = vector.broadcast %54 : vector<16x1xf32> to vector<16x2xf32>
    %56 = vector.shape_cast %53 : vector<16x1xf32> to vector<16x1xf32>
    %57 = vector.broadcast %56 : vector<16x1xf32> to vector<16x2xf32>
    %58 = arith.select %51, %55, %57 : vector<16x2xi1>, vector<16x2xf32>
    %c0_i32_18 = arith.constant 0 : i32
    %59 = vector.broadcast %c0_i32_18 : i32 to vector<16x2xi32>
    %60 = arith.cmpi eq, %49, %59 : vector<16x2xi32>
    %cst_19 = arith.constant 1.000000e+00 : f32
    %61 = vector.broadcast %cst_19 : f32 to vector<16x1xf32>
    %62 = arith.subf %61, %6 : vector<16x1xf32>
    %63 = vector.shape_cast %6 : vector<16x1xf32> to vector<16x1xf32>
    %64 = vector.broadcast %63 : vector<16x1xf32> to vector<16x2xf32>
    %65 = vector.shape_cast %62 : vector<16x1xf32> to vector<16x1xf32>
    %66 = vector.broadcast %65 : vector<16x1xf32> to vector<16x2xf32>
    %67 = arith.select %60, %64, %66 : vector<16x2xi1>, vector<16x2xf32>
    %cst_20 = arith.constant dense<0.000000e+00> : vector<16x16xf32>
    %68 = tpu.matmul %67, %58, %cst_20 {dimension_numbers = #tpu.dot_dimension_numbers<[1], [1], [0], [0], [0, 0, 1, 0], [], []>} : vector<16x2xf32>, vector<16x2xf32>, vector<16x16xf32> -> vector<16x16xf32>
    %69 = tpu.iota {dimensions = array<i32: 0>} : vector<16x16xi32>
    %70 = tpu.iota {dimensions = array<i32: 1>} : vector<16x16xi32>
    %71 = vector.broadcast %1 : i32 to vector<16x16xi32>
    %72 = arith.addi %70, %71 : vector<16x16xi32>
    %73 = arith.cmpi eq, %69, %72 : vector<16x16xi32>
    %cst_21 = arith.constant 0.000000e+00 : f32
    %cst_22 = arith.constant 1.000000e+00 : f32
    %74 = vector.broadcast %cst_21 : f32 to vector<16x16xf32>
    %75 = vector.broadcast %cst_22 : f32 to vector<16x16xf32>
    %76 = arith.select %73, %74, %75 : vector<16x16xi1>, vector<16x16xf32>
    %77 = arith.mulf %68, %76 : vector<16x16xf32>
    %cst_23 = arith.constant 1.000000e+00 : f32
    %78 = vector.broadcast %cst_23 : f32 to vector<16x16xf32>
    %79 = arith.subf %78, %68 : vector<16x16xf32>
    %cst_24 = arith.constant 0.000000e+00 : f32
    %80 = vector.broadcast %cst_24 : f32 to vector<16x16xf32>
    %81 = arith.cmpf ogt, %79, %80 : vector<16x16xf32>
    %cst_25 = arith.constant -1.000000e+30 : f32
    %82 = vector.broadcast %cst_25 : f32 to vector<16x16xf32>
    %83 = arith.select %81, %47, %82 : vector<16x16xi1>, vector<16x16xf32>
    %cst_26 = arith.constant dense<0xFF800000> : vector<16xf32>
    %84 = vector.multi_reduction <maximumf>, %83, %cst_26 [0] : vector<16x16xf32> to vector<16xf32>
    %85 = vector.shape_cast %84 : vector<16xf32> to vector<1x16xf32>
    %cst_27 = arith.constant 0.000000e+00 : f32
    %86 = vector.broadcast %cst_27 : f32 to vector<16x16xf32>
    %87 = arith.cmpf ogt, %77, %86 : vector<16x16xf32>
    %cst_28 = arith.constant 1.000000e+30 : f32
    %88 = vector.broadcast %cst_28 : f32 to vector<16x16xf32>
    %89 = arith.select %87, %47, %88 : vector<16x16xi1>, vector<16x16xf32>
    %cst_29 = arith.constant dense<0x7F800000> : vector<16xf32>
    %90 = vector.multi_reduction <minimumf>, %89, %cst_29 [0] : vector<16x16xf32> to vector<16xf32>
    %91 = vector.shape_cast %90 : vector<16xf32> to vector<1x16xf32>
    %cst_30 = arith.constant 1.000000e-01 : f32
    %92 = vector.broadcast %cst_30 : f32 to vector<16x16xf32>
    %93 = arith.subf %47, %92 : vector<16x16xf32>
    %94 = vector.broadcast %85 : vector<1x16xf32> to vector<16x16xf32>
    %95 = arith.cmpf olt, %93, %94 : vector<16x16xf32>
    %cst_31 = arith.constant 1.000000e+00 : f32
    %cst_32 = arith.constant 0.000000e+00 : f32
    %96 = vector.broadcast %cst_31 : f32 to vector<16x16xf32>
    %97 = vector.broadcast %cst_32 : f32 to vector<16x16xf32>
    %98 = arith.select %95, %96, %97 : vector<16x16xi1>, vector<16x16xf32>
    %99 = arith.mulf %77, %98 : vector<16x16xf32>
    %cst_33 = arith.constant 1.000000e-01 : f32
    %100 = vector.broadcast %cst_33 : f32 to vector<16x16xf32>
    %101 = arith.addf %47, %100 : vector<16x16xf32>
    %102 = vector.broadcast %91 : vector<1x16xf32> to vector<16x16xf32>
    %103 = arith.cmpf ogt, %101, %102 : vector<16x16xf32>
    %cst_34 = arith.constant 1.000000e+00 : f32
    %cst_35 = arith.constant 0.000000e+00 : f32
    %104 = vector.broadcast %cst_34 : f32 to vector<16x16xf32>
    %105 = vector.broadcast %cst_35 : f32 to vector<16x16xf32>
    %106 = arith.select %103, %104, %105 : vector<16x16xi1>, vector<16x16xf32>
    %107 = arith.mulf %79, %106 : vector<16x16xf32>
    %cst_36 = arith.constant 2.000000e+00 : f32
    %108 = vector.broadcast %cst_36 : f32 to vector<16x16xf32>
    %109 = arith.mulf %108, %47 : vector<16x16xf32>
    %cst_37 = arith.constant 2.000000e+00 : f32
    %110 = vector.broadcast %cst_37 : f32 to vector<16x16xf32>
    %111 = arith.subf %110, %109 : vector<16x16xf32>
    %cst_38 = arith.constant 0.000000e+00 : f32
    %112 = vector.broadcast %cst_38 : f32 to vector<16x16xf32>
    %113 = arith.maximumf %111, %112 : vector<16x16xf32>
    %114 = math.sqrt %113 : vector<16x16xf32>
    %cst_39 = arith.constant 0.000000e+00 : f32
    %115 = vector.broadcast %cst_39 : f32 to vector<16x16xf32>
    %116 = arith.cmpf ogt, %99, %115 : vector<16x16xf32>
    %cst_40 = arith.constant -8.000000e+00 : f32
    %117 = vector.broadcast %cst_40 : f32 to vector<16x16xf32>
    %118 = arith.select %116, %114, %117 : vector<16x16xi1>, vector<16x16xf32>
    %cst_41 = arith.constant 0.000000e+00 : f32
    %119 = vector.broadcast %cst_41 : f32 to vector<16x16xf32>
    %120 = arith.cmpf ogt, %107, %119 : vector<16x16xf32>
    %cst_42 = arith.constant 8.000000e+00 : f32
    %121 = vector.broadcast %cst_42 : f32 to vector<16x16xf32>
    %122 = arith.select %120, %114, %121 : vector<16x16xi1>, vector<16x16xf32>
    %123 = tpu.concatenate %118, %122 in 0 : vector<16x16xf32>, vector<16x16xf32> -> vector<32x16xf32>
    %124 = arith.truncf %123 : vector<32x16xf32> to vector<32x16xbf16>
    %c0_43 = arith.constant 0 : index
    %c0_44 = arith.constant 0 : index
    %125 = vector.load %arg5[%c0_43, %c0_44] : memref<256x32xbf16, #tpu.memory_space<vmem>>, vector<256x32xbf16>
    %cst_45 = arith.constant dense<0.000000e+00> : vector<256x16xf32>
    %126 = tpu.matmul %125, %124, %cst_45 {dimension_numbers = #tpu.dot_dimension_numbers<[1], [0], [0], [1], [0, 0, 1, 1], [], []>} : vector<256x32xbf16>, vector<32x16xbf16>, vector<256x16xf32> -> vector<256x16xf32>
    %cst_46 = arith.constant 5.000000e-02 : f32
    %127 = vector.broadcast %cst_46 : f32 to vector<256x16xf32>
    %128 = arith.addf %126, %127 : vector<256x16xf32>
    %cst_47 = arith.constant 0.000000e+00 : f32
    %129 = vector.broadcast %cst_47 : f32 to vector<256x16xf32>
    %130 = arith.maximumf %128, %129 : vector<256x16xf32>
    %131 = vector.shape_cast %130 : vector<256x16xf32> to vector<1x256x16xf32>
    %cst_48 = arith.constant dense<0.000000e+00> : vector<1xf32>
    %132 = vector.multi_reduction <add>, %131, %cst_48 [1, 2] : vector<1x256x16xf32> to vector<1xf32>
    %133 = vector.shape_cast %132 : vector<1xf32> to vector<1x1x1xf32>
    %134 = vector.extract %133[0, 0, 0] : f32 from vector<1x1x1xf32>
    %cst_49 = arith.constant 0.000000e+00 : f32
    %135 = vector.broadcast %cst_49 : f32 to vector<256x16xf32>
    %136 = arith.cmpf ogt, %130, %135 : vector<256x16xf32>
    %cst_50 = arith.constant 1.000000e+00 : f32
    %cst_51 = arith.constant 0.000000e+00 : f32
    %137 = vector.broadcast %cst_50 : f32 to vector<256x16xf32>
    %138 = vector.broadcast %cst_51 : f32 to vector<256x16xf32>
    %139 = arith.select %136, %137, %138 : vector<256x16xi1>, vector<256x16xf32>
    %140 = vector.shape_cast %139 : vector<256x16xf32> to vector<1x256x16xf32>
    %cst_52 = arith.constant dense<0.000000e+00> : vector<1xf32>
    %141 = vector.multi_reduction <add>, %140, %cst_52 [1, 2] : vector<1x256x16xf32> to vector<1xf32>
    %142 = vector.shape_cast %141 : vector<1xf32> to vector<1x1x1xf32>
    %143 = vector.extract %142[0, 0, 0] : f32 from vector<1x1x1xf32>
    %cst_53 = arith.constant 0.000000e+00 : f32
    %144 = vector.broadcast %cst_53 : f32 to vector<16x1xf32>
    %145 = arith.maximumf %14, %144 : vector<16x1xf32>
    %146 = arith.mulf %14, %12 : vector<16x1xf32>
    %147 = arith.subf %145, %146 : vector<16x1xf32>
    %148 = math.absf %14 : vector<16x1xf32>
    %cst_54 = arith.constant 0.000000e+00 : f32
    %149 = vector.broadcast %cst_54 : f32 to vector<16x1xf32>
    %150 = arith.subf %149, %148 : vector<16x1xf32>
    %151 = math.exp %150 : vector<16x1xf32>
    %152 = math.log1p %151 : vector<16x1xf32>
    %153 = arith.addf %147, %152 : vector<16x1xf32>
    %154 = vector.shape_cast %153 : vector<16x1xf32> to vector<1x16x1xf32>
    %cst_55 = arith.constant dense<0.000000e+00> : vector<1xf32>
    %155 = vector.multi_reduction <add>, %154, %cst_55 [1, 2] : vector<1x16x1xf32> to vector<1xf32>
    %156 = vector.shape_cast %155 : vector<1xf32> to vector<1x1x1xf32>
    %157 = vector.extract %156[0, 0, 0] : f32 from vector<1x1x1xf32>
    %158 = tpu.iota {dimensions = array<i32: 0>} : vector<8x128xi32>
    %c0_i32_56 = arith.constant 0 : i32
    %159 = vector.broadcast %c0_i32_56 : i32 to vector<8x128xi32>
    %160 = arith.cmpi eq, %158, %159 : vector<8x128xi32>
    %cst_57 = arith.constant 0.000000e+00 : f32
    %161 = vector.broadcast %27 : f32 to vector<8x128xf32>
    %162 = vector.broadcast %cst_57 : f32 to vector<8x128xf32>
    %163 = arith.select %160, %161, %162 : vector<8x128xi1>, vector<8x128xf32>
    %c1_i32 = arith.constant 1 : i32
    %164 = vector.broadcast %c1_i32 : i32 to vector<8x128xi32>
    %165 = arith.cmpi eq, %158, %164 : vector<8x128xi32>
    %cst_58 = arith.constant 0.000000e+00 : f32
    %166 = vector.broadcast %31 : f32 to vector<8x128xf32>
    %167 = vector.broadcast %cst_58 : f32 to vector<8x128xf32>
    %168 = arith.select %165, %166, %167 : vector<8x128xi1>, vector<8x128xf32>
    %169 = arith.addf %163, %168 : vector<8x128xf32>
    %c2_i32 = arith.constant 2 : i32
    %170 = vector.broadcast %c2_i32 : i32 to vector<8x128xi32>
    %171 = arith.cmpi eq, %158, %170 : vector<8x128xi32>
    %cst_59 = arith.constant 0.000000e+00 : f32
    %172 = vector.broadcast %134 : f32 to vector<8x128xf32>
    %173 = vector.broadcast %cst_59 : f32 to vector<8x128xf32>
    %174 = arith.select %171, %172, %173 : vector<8x128xi1>, vector<8x128xf32>
    %175 = arith.addf %169, %174 : vector<8x128xf32>
    %c3_i32 = arith.constant 3 : i32
    %176 = vector.broadcast %c3_i32 : i32 to vector<8x128xi32>
    %177 = arith.cmpi eq, %158, %176 : vector<8x128xi32>
    %cst_60 = arith.constant 0.000000e+00 : f32
    %178 = vector.broadcast %143 : f32 to vector<8x128xf32>
    %179 = vector.broadcast %cst_60 : f32 to vector<8x128xf32>
    %180 = arith.select %177, %178, %179 : vector<8x128xi1>, vector<8x128xf32>
    %181 = arith.addf %175, %180 : vector<8x128xf32>
    %c4_i32 = arith.constant 4 : i32
    %182 = vector.broadcast %c4_i32 : i32 to vector<8x128xi32>
    %183 = arith.cmpi eq, %158, %182 : vector<8x128xi32>
    %cst_61 = arith.constant 0.000000e+00 : f32
    %184 = vector.broadcast %157 : f32 to vector<8x128xf32>
    %185 = vector.broadcast %cst_61 : f32 to vector<8x128xf32>
    %186 = arith.select %183, %184, %185 : vector<8x128xi1>, vector<8x128xf32>
    %187 = arith.addf %181, %186 : vector<8x128xf32>
    %c0_62 = arith.constant 0 : index
    %c0_63 = arith.constant 0 : index
    %188 = vector.load %arg6[%c0_62, %c0_63] : memref<8x128xf32, #tpu.memory_space<vmem>>, vector<8x128xf32>
    tpu.vector_store %arg6[%c0_62, %c0_63], %187 {strides = array<i32>} : memref<8x128xf32, #tpu.memory_space<vmem>>, vector<8x128xf32>,
    return
  }
  func.func @transform_0(%arg0: i32) -> (i32, i32) {
    %c0_i32 = arith.constant 0 : i32
    %c0_i32_0 = arith.constant 0 : i32
    %c0_i32_1 = arith.constant 0 : i32
    return %c0_i32, %c0_i32_0 : i32, i32
  }
  func.func @transform_1(%arg0: i32) -> (i32, i32) {
    %c0_i32 = arith.constant 0 : i32
    %c0_i32_0 = arith.constant 0 : i32
    %c0_i32_1 = arith.constant 0 : i32
    return %c0_i32, %c0_i32_0 : i32, i32
  }
  func.func @transform_2(%arg0: i32) -> (i32, i32) {
    %c0_i32 = arith.constant 0 : i32
    %c0_i32_0 = arith.constant 0 : i32
    %c0_i32_1 = arith.constant 0 : i32
    return %c0_i32, %c0_i32_0 : i32, i32
  }
  func.func @transform_3(%arg0: i32) -> (i32, i32) {
    %c0_i32 = arith.constant 0 : i32
    %c0_i32_0 = arith.constant 0 : i32
    %c0_i32_1 = arith.constant 0 : i32
    return %c0_i32, %c0_i32_0 : i32, i32
  }
  func.func @transform_4(%arg0: i32) -> (i32, i32) {
    %c0_i32 = arith.constant 0 : i32
    %c0_i32_0 = arith.constant 0 : i32
    %c0_i32_1 = arith.constant 0 : i32
    return %c0_i32, %c0_i32_0 : i32, i32
  }
  func.func @transform_5(%arg0: i32) -> (i32, i32) {
    %c0_i32 = arith.constant 0 : i32
    %c0_i32_0 = arith.constant 0 : i32
    return %arg0, %c0_i32 : i32, i32
  }
}

</mosaic_0001>

<bundles_post_ra>
// kernel: tpu_custom_call.1
= control target key start
LH: loop header
LB: loop body
LE: loop exit
PB: predicated region body
PF: predicated region fallthrough
CT: control target
= control target key end

     0   :  { %v1089_v5 = vmov 0   ;;  %s1606_s0 = inlined_call_operand.vmem [shape: f32[16,32], index: 0, kind: input, shape index: {}]   ;;  %s1607_s1 = inlined_call_operand.vmem [shape: f32[1,32], index: 1, kind: input, shape index: {}]   ;;  %s1608_s2 = inlined_call_operand.vmem [shape: f32[16,1], index: 2, kind: input, shape index: {}]   ;;  %s1609_s3 = inlined_call_operand.vmem [shape: f32[16,1], index: 3, kind: input, shape index: {}]   ;;  %s1610_s4 = inlined_call_operand.vmem [shape: bf16[256,32], index: 4, kind: input, shape index: {}]   ;;  %s1611_s5 = inlined_call_operand.hbm [shape: f32[8,128], index: 5, kind: output, shape index: {}]  }
   0x1   :  { %v1042_v0 = vld [vmem:[%s1607_s1] ss:$0 sm:$0xff]  ;;  %v1132_v2 = vld [vmem:[%s1609_s3 + $0x8] sm:$0xff]  ;;  %1039 = vset.pattern.permute.xlu2 %v1089_v5  ;;  %1041 = vset.pattern.permute.xlu1 %v1089_v5 }
   0x2   :  { %v34_v1 = vld [vmem:[%s1606_s0] sm:$0xff]  ;;  %v35_v3 = vld [vmem:[%s1606_s0 + $0x8] sm:$0xff] }
   0x3   :  { %v1137_v4 = vsub.f32 %v34_v1, %v1042_v0 }
   0x4   :  { %10 = vsyncpa [#allocation3], 0  ;;  %vm46_vm0 = vcmask 261120   ;;  %174 = vperm.xlu2 %1039, %v1132_v2   ;;  %1040 = vset.pattern.permute.xlu0 %v1089_v5  ;;  %v1142_v7 = vsub.f32 %v35_v3, %v1042_v0  ;;  %v166_v9 = vsub.f32 1.0, %v1132_v2  ;;  %v1152_v12 = vld [vmem:[%s1609_s3] sm:$0xff]  ;;  %vm54_vm2 = vcmp.eq.f32.partialorder %v1132_v2, 0.0 }
   0x5   :  { %v44_v6 = vmul.f32 %v1137_v4, %v1137_v4  ;;  %v189_v13 = vsub.f32 1.0, %v1152_v12  ;;  %vm53_vm1 = vcmp.eq.f32.partialorder %v1152_v12, 0.0  ;;  %v1090_v14 = vmov 0.0   ;;  %s1092_s11 = smov [#allocation2]   ;;  %s907_s15 = sshll.u32 %s1611_s5, 4  ;;  %s908_s15 = int_to_ptr.hbm [resolvable:$true] %s907_s15 }
   0x6   :  { %v45_v10 = vmul.f32 %v1142_v7, %v1142_v7  ;;  %v55_v15 = vsel %vm53_vm1, 1.0, %v1090_v14  ;;  %v56_v16 = vsel %vm54_vm2, 1.0, %v1090_v14  ;;  %vm59_vm3 = vcmask 7168   ;;  %s905_s12 = sshll.u32 %s1092_s11, 4  ;;  %s906_s12 = int_to_ptr.vmem [resolvable:$true] %s905_s12 }
   0x7   :  { %v47_v8 = vsel %vm46_vm0, %v44_v6, 0.0  ;;  %v72_v17 = vsel %vm59_vm3, %v55_v15, 0.0  ;;  %v73_v18 = vsel %vm59_vm3, %v56_v16, 0.0  ;;  %v162_v52 = vlaneseq }
   0x8   :  { %48 = vadd.xlane.f32.xlu0 %v47_v8  ;;  %87 = vadd.xlane.f32.xlu1 %v47_v8  ;;  %v50_v11 = vsel %vm46_vm0, %v45_v10, 0.0  ;;  %v74_v19 = vadd.f32 %v73_v18, %v72_v17  ;;  %vm213_vm1 = vcmask 15360  }
   0x9   :  { %v1175_v59 = vand.u32 127, %v162_v52 }
   0xb   :  { %vm164_vm14 = vcmp.eq.s32.totalorder %v1175_v59, 0 }
   0xc   :  { %184 = vperm.xlu2 %1039, %v166_v9  }
  0x10   :  { %51 = vadd.xlane.f32.xlu0 %v50_v11  ;;  %90 = vadd.xlane.f32.xlu1 %v50_v11 }
  0x14   :  { %193 = vperm.xlu2 %1039, %v1152_v12  }
  0x1c   :  { %203 = vperm.xlu2 %1039, %v189_v13  }
  0x24   :  { %198 = vperm.xlu2 %1039, %v1132_v2   ;;  %169 = vperm.xlu0 %1040, %v1152_v12  }
  0x29   :  { %179 = vperm.xlu1 %1041, %v189_v13  }
  0x2c   :  { %208 = vperm.xlu2 %1039, %v166_v9  }
  0x55   :  { %75 = vadd.xlane.f32.xlu2 %v74_v19 }
  0x5e   :  { %v175_v33 = vpop.permute.xlu2 %174 }
  0x66   :  { %v185_v47 = vpop.permute.xlu2 %184 }
  0x67   :  { %v188_v10 = vsel %vm164_vm14, %v175_v33, %v185_v47  ;;  %v1091_v47 = vmov 1.0  }
  0x6e   :  { %v194_v1 = vpop.permute.xlu2 %193 }
  0x76   :  { %v204_v18 = vpop.permute.xlu2 %203 }
  0x7b   :  { %v49_v20 = vpop.xlane.xlu0 %48  ;;  %v88_v21 = vpop.xlane.xlu1 %87 }
  0x7c   :  { %v92_v22 = vmax.f32 %v49_v20, 1e-24  ;;  %v1164_v23 = vmax.f32 %v88_v21, 1e-24  ;;  %v57_v24 = vmul.f32 %v55_v15, %v49_v20  ;;  %v211_v20 = vsel %vm164_vm14, %v194_v1, %v204_v18 }
  0x7e   :  { %1043 = vrsqrt.f32 %v92_v22  ;;  %v60_v35 = vsel %vm59_vm3, %v57_v24, 0.0  ;;  %vm100_vm5 = vweird.f32 %v92_v22  ;;  %vm125_vm12 = vweird.f32 %v1164_v23  ;;  %v199_v19 = vpop.permute.xlu2 %198 }
  0x7f   :  { %1045 = vrsqrt.f32 %v1164_v23 }
  0x83   :  { %v52_v25 = vpop.xlane.xlu0 %51  ;;  %v91_v26 = vpop.xlane.xlu1 %90 }
  0x84   :  { %v1044_v27 = vpop.eup %1043  ;;  %v58_v28 = vmul.f32 %v56_v16, %v52_v25  ;;  %v93_v29 = vmax.f32 %v52_v25, 1e-24  ;;  %v118_v30 = vmax.f32 %v91_v26, 1e-24 }
  0x85   :  { %v95_v31 = vmul.f32 %v1044_v27, %v92_v22  ;;  %v1167_v32 = vpop.eup %1045  ;;  %vm101_vm4 = vweird.f32 %v1044_v27 }
  0x86   :  { %1047 = vrsqrt.f32 %v93_v29  ;;  %v61_v36 = vsel %vm59_vm3, %v58_v28, 0.0  ;;  %v120_v39 = vmul.f32 %v1167_v32, %v1164_v23  ;;  %vm102_vm7 = vmor %vm100_vm5, %vm101_vm4  ;;  %vm110_vm8 = vweird.f32 %v93_v29  ;;  %v209_v21 = vpop.permute.xlu2 %208 }
  0x87   :  { %v96_v34 = vmul.f32 %v1044_v27, %v95_v31  ;;  %1049 = vrsqrt.f32 %v118_v30  ;;  %v62_v37 = vadd.f32 %v61_v36, %v60_v35  ;;  %vm135_vm10 = vweird.f32 %v118_v30 }
  0x88   :  { %v121_v43 = vmul.f32 %v1167_v32, %v120_v39  ;;  %vm126_vm13 = vweird.f32 %v1167_v32 }
  0x89   :  { %v97_v38 = vmul.f32 0.5, %v96_v34  ;;  %63 = vadd.xlane.f32.xlu1 %v62_v37  ;;  %vm127_vm2 = vmor %vm125_vm12, %vm126_vm13 }
  0x8a   :  { %v122_v49 = vmul.f32 0.5, %v121_v43 }
  0x8b   :  { %v98_v42 = vsub.f32 1.5, %v97_v38 }
  0x8c   :  { %v1048_v40 = vpop.eup %1047  ;;  %v123_v56 = vsub.f32 1.5, %v122_v49 }
  0x8d   :  { %v1050_v41 = vpop.eup %1049  ;;  %v105_v44 = vmul.f32 %v1048_v40, %v93_v29  ;;  %v99_v51 = vmul.f32 %v1044_v27, %v98_v42  ;;  %vm111_vm6 = vweird.f32 %v1048_v40 }
  0x8e   :  { %v130_v45 = vmul.f32 %v1050_v41, %v118_v30  ;;  %vm112_vm9 = vmor %vm110_vm8, %vm111_vm6  ;;  %vm136_vm11 = vweird.f32 %v1050_v41  ;;  %v124_v0 = vmul.f32 %v1167_v32, %v123_v56  ;;  %vm266_vm8 = vcmask 130048  }
  0x8f   :  { %v106_v46 = vmul.f32 %v1048_v40, %v105_v44  ;;  %v103_v57 = vsel %vm102_vm7, %v1044_v27, %v99_v51  ;;  %vm137_vm15 = vmor %vm135_vm10, %vm136_vm11 }
  0x90   :  { %v131_v48 = vmul.f32 %v1050_v41, %v130_v45  ;;  %v114_v62 = vmul.f32 %v103_v57, %v1137_v4  ;;  %v128_v11 = vsel %vm127_vm2, %v1167_v32, %v124_v0 }
  0x91   :  { %v107_v50 = vmul.f32 0.5, %v106_v46  ;;  %v139_v16 = vmul.f32 %v128_v11, %v1137_v4 }
  0x92   :  { %v132_v53 = vmul.f32 0.5, %v131_v48 }
  0x93   :  { %v108_v54 = vsub.f32 1.5, %v107_v50 }
  0x94   :  { %v133_v55 = vsub.f32 1.5, %v132_v53 }
  0x95   :  { %v109_v58 = vmul.f32 %v1048_v40, %v108_v54 }
  0x96   :  { %v134_v60 = vmul.f32 %v1050_v41, %v133_v55  ;;  %v170_v8 = vpop.permute.xlu0 %169 }
  0x97   :  { %v113_v61 = vsel %vm112_vm9, %v1048_v40, %v109_v58  ;;  %v1205_v40 = vshrl.u32 %v162_v52, 7 }
  0x98   :  { %v115_v63 = vmul.f32 %v113_v61, %v1142_v7  ;;  %v138_v5 = vsel %vm137_vm15, %v1050_v41, %v134_v60 }
  0x99   :  { %v140_v13 = vmul.f32 %v138_v5, %v1142_v7  ;;  %v212_v7 = vsel %vm164_vm14, %v199_v19, %v209_v21  ;;  %vm254_vm4 = vcmp.eq.s32.totalorder %v1205_v40, %v1175_v59  ;;  %v251_v44 = vadd.s32 8, %v1205_v40 }
  0x9a   :  { %v116_v3 = vpack.c.bf16 %v115_v63, %v114_v62  ;;  %v256_v48 = vsel %vm254_vm4, 0.0, %v1091_v47 }
  0x9b   :  { %v180_v9 = vpop.permute.xlu1 %179  ;;  %v141_v17 = vpack.c.bf16 %v140_v13, %v139_v16  ;;  %vm255_vm5 = vcmp.eq.s32.totalorder %v251_v44, %v1175_v59 }
  0x9c   :  { %v146_v6 = vsel %vm46_vm0, %v116_v3, 0  ;;  %v187_v15 = vsel %vm164_vm14, %v170_v8, %v180_v9  ;;  %v257_v53 = vsel %vm255_vm5, 0.0, %v1091_v47 }
  0x9d   :  { %155 = vmatpush.bf16.xpose.msra.mxu1 %v146_v6 }
  0xa4   :  { %916 = vmatmul.msk.bf16.vlgmr.msra.gmra.mxu1 %vm46_vm0, %v141_v17 }
  0xa5   :  { %917 = vmatpush.xpose.msk.msrb.mxu1 %vm213_vm1, %v188_v10 }
  0xa9   :  { %918 = vmatpush.xpose.msk.msrb.mxu1 %vm213_vm1, %v187_v15 }
  0xb4   :  { %919 = vmatmul.msk.f32.vlgmr.msrb.gmra.mxu1 %vm213_vm1, %v211_v20 }
  0xbc   :  { %920 = vmatmul.msk.f32.gmra.mxu1 %vm213_vm1, %v212_v7 }
  0xc8   :  { %v76_v22 = vpop.xlane.xlu2 %75 }
  0xc9   :  { %v77_v4 = vrot.slane %v76_v22, 4 }
  0xcb   :  { %v78_v23 = vadd.f32 %v77_v4, %v76_v22 }
  0xcd   :  { %v79_v24 = vrot.slane %v78_v23, 2 }
  0xcf   :  { %v80_v27 = vadd.f32 %v79_v24, %v78_v23 }
  0xd1   :  { %v81_v30 = vrot.slane %v80_v27, 1 }
  0xd3   :  { %v82_v33 = vadd.f32 %v81_v30, %v80_v27 }
  0xfc   :  { %v64_v25 = vpop.xlane.xlu1 %63 }
  0xfd   :  { %v65_v26 = vrot.slane %v64_v25, 4 }
  0xff   :  { %v66_v28 = vadd.f32 %v65_v26, %v64_v25 }
 0x101   :  { %v67_v29 = vrot.slane %v66_v28, 2 }
 0x103   :  { %v68_v31 = vadd.f32 %v67_v29, %v66_v28 }
 0x105   :  { %v69_v32 = vrot.slane %v68_v31, 1 }
 0x107   :  { %v70_v34 = vadd.f32 %v69_v32, %v68_v31 }
 0x109   :  { %1025 = vpush %v70_v34 }
 0x10a   :  { %1027 = vpush %v82_v33 }
 0x121   :  { %v157_v35 = vpop.f32.mrf.mxu1 }
 0x122   :  { %v305_v36 = vmul.f32 2.0, %v157_v35  ;;  %v921_v26 = vadd.f32 -0.1, %v157_v35  ;;  %v297_v27 = vadd.f32 0.1, %v157_v35 }
 0x124   :  { %v307_v37 = vsub.f32 2.0, %v305_v36 }
 0x126   :  { %v1200_v38 = vmax.f32 %v307_v37, 0.0 }
 0x128   :  { %1051 = vrsqrt.f32 %v1200_v38  ;;  %vm318_vm11 = vcmp.eq.f32.partialorder %v1200_v38, inf  ;;  %vm320_vm12 = vcmp.eq.f32.partialorder %v1200_v38, 0.0  ;;  %v321_v31 = vand.u32 2147483648, %v1200_v38 }
 0x129   :  { %v1202_v39 = vpop.f32.mrf.mxu1 }
 0x12a   :  { %v306_v41 = vmul.f32 2.0, %v1202_v39  ;;  %v922_v30 = vadd.f32 -0.1, %v1202_v39  ;;  %v298_v34 = vadd.f32 0.1, %v1202_v39 }
 0x12c   :  { %v308_v42 = vsub.f32 2.0, %v306_v41 }
 0x12e   :  { %v1209_v43 = vmax.f32 %v308_v42, 0.0  ;;  %v1052_v45 = vpop.eup %1051 }
 0x12f   :  { %v312_v51 = vmul.f32 %v1052_v45, %v1200_v38 }
 0x130   :  { %1053 = vrsqrt.f32 %v1209_v43  ;;  %vm330_vm13 = vcmp.eq.f32.partialorder %v1209_v43, inf  ;;  %vm332_vm14 = vcmp.eq.f32.partialorder %v1209_v43, 0.0  ;;  %v333_v37 = vand.u32 2147483648, %v1209_v43 }
 0x131   :  { %v1215_v46 = vpop.f32.mrf.mxu1  ;;  %v313_v56 = vmul.f32 %v1052_v45, %v312_v51 }
 0x132   :  { %v1218_v49 = vmul.f32 %v256_v48, %v1215_v46  ;;  %v260_v50 = vsub.f32 1.0, %v1215_v46 }
 0x133   :  { %v314_v63 = vmul.f32 0.5, %v313_v56 }
 0x134   :  { %vm1226_vm6 = vcmp.gt.f32.partialorder %v260_v50, 0.0  ;;  %vm276_vm7 = vcmp.gt.f32.partialorder %v1218_v49, 0.0 }
 0x135   :  { %v264_v59 = vsel %vm1226_vm6, %v157_v35, -1e+30  ;;  %v278_v62 = vsel %vm276_vm7, %v157_v35, 1e+30  ;;  %v315_v13 = vsub.f32 1.5, %v314_v63  ;;  %v1005_v63 = vld [vmem:[%s1610_s4 + $0x10] sm:$0xff] }
 0x136   :  { %v1054_v52 = vpop.eup %1053  ;;  %v267_v5 = vsel %vm266_vm8, %v264_v59, -inf  ;;  %v280_v6 = vsel %vm266_vm8, %v278_v62, inf  ;;  %v1015_v59 = vld [vmem:[%s1610_s4 + $0x60] sm:$0xff]  ;;  %v1008_v62 = vld [vmem:[%s1610_s4 + $0x28] sm:$0xff] }
 0x137   :  { %v324_v54 = vmul.f32 %v1054_v52, %v1209_v43  ;;  %v316_v20 = vmul.f32 %v1052_v45, %v315_v13 }
 0x139   :  { %v246_v57 = vpop.f32.mrf.mxu1  ;;  %v325_v58 = vmul.f32 %v1054_v52, %v324_v54  ;;  %v317_v24 = vmul.f32 %v316_v20, %v1200_v38 }
 0x13a   :  { %v259_v60 = vmul.f32 %v257_v53, %v246_v57  ;;  %v261_v61 = vsub.f32 1.0, %v246_v57 }
 0x13b   :  { %v326_v0 = vmul.f32 0.5, %v325_v58  ;;  %v319_v36 = vsel %vm318_vm11, %v1200_v38, %v317_v24  ;;  %v1003_v38 = vld [vmem:[%s1610_s4] sm:$0xff] }
 0x13c   :  { %vm263_vm9 = vcmp.gt.f32.partialorder %v261_v61, 0.0  ;;  %vm277_vm10 = vcmp.gt.f32.partialorder %v259_v60, 0.0  ;;  %v1007_v58 = vld [vmem:[%s1610_s4 + $0x20] sm:$0xff] }
 0x13d   :  { %v265_v1 = vsel %vm263_vm9, %v1202_v39, -1e+30  ;;  %v279_v3 = vsel %vm277_vm10, %v1202_v39, 1e+30  ;;  %v327_v15 = vsub.f32 1.5, %v326_v0  ;;  %v1011_v0 = vld [vmem:[%s1610_s4 + $0x40] sm:$0xff] }
 0x13e   :  { %v268_v8 = vsel %vm266_vm8, %v265_v1, -inf  ;;  %v281_v9 = vsel %vm266_vm8, %v279_v3, inf  ;;  %v1016_v1 = vld [vmem:[%s1610_s4 + $0x68] sm:$0xff]  ;;  %v1006_v3 = vld [vmem:[%s1610_s4 + $0x18] sm:$0xff] }
 0x13f   :  { %v269_v10 = vmax.f32 %v267_v5, %v268_v8  ;;  %v282_v11 = vmin.f32 %v280_v6, %v281_v9  ;;  %v328_v21 = vmul.f32 %v1054_v52, %v327_v15  ;;  %v1012_v5 = vld [vmem:[%s1610_s4 + $0x48] sm:$0xff]  ;;  %v1017_v6 = vld [vmem:[%s1610_s4 + $0x70] sm:$0xff]  ;;  %v1018_v9 = vld [vmem:[%s1610_s4 + $0x78] sm:$0xff] }
 0x140   :  { %v1013_v8 = vld [vmem:[%s1610_s4 + $0x50] sm:$0xff] }
 0x141   :  { %v270_v16 = vrot.slane %v269_v10, 4  ;;  %v283_v17 = vrot.slane %v282_v11, 4  ;;  %v329_v25 = vmul.f32 %v328_v21, %v1209_v43 }
 0x143   :  { %v271_v18 = vmax.f32 %v269_v10, %v270_v16  ;;  %v284_v19 = vmin.f32 %v282_v11, %v283_v17  ;;  %v331_v35 = vsel %vm330_vm13, %v1209_v43, %v329_v25  ;;  %v322_v43 = vsel %vm320_vm12, %v321_v31, %v319_v36 }
 0x144   :  { %v334_v52 = vsel %vm332_vm14, %v333_v37, %v331_v35 }
 0x145   :  { %v272_v7 = vrot.slane %v271_v18, 2  ;;  %v285_v22 = vrot.slane %v284_v19, 2 }
 0x147   :  { %v273_v4 = vmax.f32 %v271_v18, %v272_v7  ;;  %v286_v23 = vmin.f32 %v284_v19, %v285_v22  ;;  %v1331_v22 = vld [vmem:[%s1608_s2 + $0x8] sm:$0xff] }
 0x149   :  { %v274_v28 = vrot.slane %v273_v4, 1  ;;  %v287_v29 = vrot.slane %v286_v23, 1 }
 0x14b   :  { %v275_v32 = vmax.f32 %v273_v4, %v274_v28  ;;  %v288_v33 = vmin.f32 %v286_v23, %v287_v29  ;;  %v1336_v4 = vld [vmem:[%s1608_s2] sm:$0xff]  ;;  %v841_v23 = vand.u32 2147483647, %v1331_v22  ;;  %s1026_s2 = spop %1025 }
 0x14c   :  { %v840_v24 = vand.u32 2147483647, %v1336_v4  ;;  %s1028_s7 = spop %1027 }
 0x14d   :  { %vm291_vm15 = vcmp.lt.f32.partialorder %v921_v26, %v275_v32  ;;  %vm292_vm1 = vcmp.lt.f32.partialorder %v922_v30, %v275_v32  ;;  %vm299_vm2 = vcmp.gt.f32.partialorder %v297_v27, %v288_v33  ;;  %vm300_vm4 = vcmp.gt.f32.partialorder %v298_v34, %v288_v33 }
 0x14e   :  { %v293_v41 = vsel %vm291_vm15, 1.0, %v1090_v14  ;;  %v294_v42 = vsel %vm292_vm1, 1.0, %v1090_v14  ;;  %v301_v39 = vsel %vm299_vm2, 1.0, %v1090_v14  ;;  %v302_v44 = vsel %vm300_vm4, 1.0, %v1090_v14 }
 0x14f   :  { %v295_v45 = vmul.f32 %v293_v41, %v1218_v49  ;;  %v296_v47 = vmul.f32 %v294_v42, %v259_v60  ;;  %v303_v48 = vmul.f32 %v301_v39, %v260_v50  ;;  %v304_v51 = vmul.f32 %v302_v44, %v261_v61  ;;  %v1009_v49 = vld [vmem:[%s1610_s4 + $0x30] sm:$0xff]  ;;  %v1014_v50 = vld [vmem:[%s1610_s4 + $0x58] sm:$0xff]  ;;  %v1004_v60 = vld [vmem:[%s1610_s4 + $0x8] sm:$0xff] }
 0x150   :  { %v1010_v61 = vld [vmem:[%s1610_s4 + $0x38] sm:$0xff]  ;;  %v843_v28 = vsub.f32 0.0, %v841_v23  ;;  %v842_v32 = vsub.f32 0.0, %v840_v24 }
 0x151   :  { %vm335_vm5 = vcmp.gt.f32.partialorder %v295_v45, 0.0  ;;  %vm336_vm6 = vcmp.gt.f32.partialorder %v296_v47, 0.0  ;;  %vm339_vm7 = vcmp.gt.f32.partialorder %v303_v48, 0.0  ;;  %vm340_vm9 = vcmp.gt.f32.partialorder %v304_v51, 0.0 }
 0x152   :  { %v341_v53 = vsel %vm339_vm7, %v322_v43, 8.0  ;;  %v342_v54 = vsel %vm340_vm9, %v334_v52, 8.0  ;;  %v337_v56 = vsel %vm335_vm5, %v322_v43, -8.0  ;;  %v338_v57 = vsel %vm336_vm6, %v334_v52, -8.0 }
 0x153   :  { %v344_v55 = vpack.c.bf16 %v342_v54, %v341_v53  ;;  %v343_v46 = vpack.c.bf16 %v338_v57, %v337_v56  ;;  %v846_v41 = vmul.f32 1.442695, %v843_v28  ;;  %v844_v44 = vmul.f32 1.442695, %v842_v32 }
 0x154   :  { %v1351_v53 = vmul.f32 %v1336_v4, %v1152_v12 }
 0x155   :  { %511 = vmatpush.bf16.msra.mxu0 %v344_v55  ;;  %1019 = vmatpush.bf16.msra.mxu1 %v344_v55  ;;  %1055 = vpow2.f32 %v846_v41 }
 0x156   :  { %1020 = vmatpush.bf16.msra.mxu2 %v344_v55  ;;  %1021 = vmatpush.bf16.msra.mxu3 %v344_v55  ;;  %1057 = vpow2.f32 %v844_v44 }
 0x159   :  { %512 = vmatpush.bf16.msra.mxu0 %v343_v46  ;;  %1022 = vmatpush.bf16.msra.mxu1 %v343_v46 }
 0x15a   :  { %1023 = vmatpush.bf16.msra.mxu2 %v343_v46  ;;  %1024 = vmatpush.bf16.msra.mxu3 %v343_v46 }
 0x15c   :  { %987 = vmatmul.msk.bf16.vlgmr.msra.gmra.mxu0 %vm46_vm0, %v1003_v38  ;;  %991 = vmatmul.msk.bf16.vlgmr.msra.gmra.mxu1 %vm46_vm0, %v1007_v58 }
 0x15d   :  { %993 = vmatmul.msk.bf16.vlgmr.msra.gmra.mxu2 %vm46_vm0, %v1009_v49  ;;  %998 = vmatmul.msk.bf16.vlgmr.msra.gmra.mxu3 %vm46_vm0, %v1014_v50 }
 0x16c   :  { %988 = vmatmul.msk.bf16.gmra.mxu0 %vm46_vm0, %v1004_v60  ;;  %992 = vmatmul.msk.bf16.gmra.mxu1 %vm46_vm0, %v1008_v62 }
 0x16d   :  { %994 = vmatmul.msk.bf16.gmra.mxu2 %vm46_vm0, %v1010_v61  ;;  %999 = vmatmul.msk.bf16.gmra.mxu3 %vm46_vm0, %v1015_v59 }
 0x17c   :  { %989 = vmatmul.msk.bf16.gmra.mxu0 %vm46_vm0, %v1005_v63 }
 0x17d   :  { %995 = vmatmul.msk.bf16.gmra.mxu2 %vm46_vm0, %v1011_v0  ;;  %1000 = vmatmul.msk.bf16.gmra.mxu3 %vm46_vm0, %v1016_v1 }
 0x18c   :  { %990 = vmatmul.msk.bf16.gmra.mxu0 %vm46_vm0, %v1006_v3  ;;  %v1369_v3 = vpop.eup %1055 }
 0x18d   :  { %996 = vmatmul.msk.bf16.gmra.mxu2 %vm46_vm0, %v1012_v5  ;;  %1001 = vmatmul.msk.bf16.gmra.mxu3 %vm46_vm0, %v1017_v6 }
 0x19d   :  { %997 = vmatmul.msk.bf16.gmra.mxu2 %vm46_vm0, %v1013_v8  ;;  %1002 = vmatmul.msk.bf16.gmra.mxu3 %vm46_vm0, %v1018_v9 }
 0x1d9   :  { %v514_v10 = vpop.f32.mrf.mxu0  ;;  %v534_v19 = vpop.f32.mrf.mxu1 }
 0x1da   :  { %v515_v25 = vadd.f32 0.05, %v514_v10  ;;  %v535_v34 = vadd.f32 0.05, %v534_v19  ;;  %v1381_v10 = vpop.eup %1057 }
 0x1dc   :  { %v594_v33 = vmax.f32 %v515_v25, 0.0  ;;  %v602_v45 = vmax.f32 %v535_v34, 0.0 }
 0x1de   :  { %vm698_vm0 = vcmp.gt.f32.partialorder %v594_v33, 0.0  ;;  %v626_v56 = vsel %vm266_vm8, %v594_v33, 0.0  ;;  %vm706_vm12 = vcmp.gt.f32.partialorder %v602_v45, 0.0 }
 0x1df   :  { %v730_v54 = vsel %vm698_vm0, 1.0, %v1090_v14  ;;  %v738_v0 = vsel %vm706_vm12, 1.0, %v1090_v14 }
 0x1e0   :  { %v544_v11 = vpop.f32.mrf.mxu2  ;;  %v569_v13 = vpop.f32.mrf.mxu3  ;;  %v762_v58 = vsel %vm266_vm8, %v730_v54, 0.0  ;;  %v1390_v19 = vsel %vm266_vm8, %v738_v0, 0.0 }
 0x1e1   :  { %v516_v15 = vpop.f32.mrf.mxu0  ;;  %v545_v29 = vadd.f32 0.05, %v544_v11  ;;  %v536_v31 = vpop.f32.mrf.mxu1  ;;  %v1344_v37 = vadd.f32 0.05, %v569_v13 }
 0x1e2   :  { %v517_v26 = vadd.f32 0.05, %v516_v15  ;;  %v537_v61 = vadd.f32 0.05, %v536_v31 }
 0x1e3   :  { %v606_v42 = vmax.f32 %v545_v29, 0.0  ;;  %v616_v48 = vmax.f32 %v1344_v37, 0.0 }
 0x1e4   :  { %v595_v35 = vmax.f32 %v517_v26, 0.0 }
 0x1e5   :  { %vm710_vm11 = vcmp.gt.f32.partialorder %v606_v42, 0.0  ;;  %vm720_vm13 = vcmp.gt.f32.partialorder %v616_v48, 0.0  ;;  %v1372_v5 = vsel %vm266_vm8, %v606_v42, 0.0 }
 0x1e6   :  { %vm699_vm10 = vcmp.gt.f32.partialorder %v595_v35, 0.0  ;;  %v742_v49 = vsel %vm710_vm11, 1.0, %v1090_v14  ;;  %v627_v60 = vsel %vm266_vm8, %v595_v35, 0.0  ;;  %v1379_v9 = vsel %vm720_vm13, 1.0, %v1090_v14 }
 0x1e7   :  { %v731_v57 = vsel %vm699_vm10, 1.0, %v1090_v14  ;;  %v1375_v6 = vsel %vm266_vm8, %v742_v49, 0.0  ;;  %v628_v11 = vadd.f32 %v627_v60, %v626_v56 }
 0x1e8   :  { %v546_v16 = vpop.f32.mrf.mxu2  ;;  %v571_v17 = vpop.f32.mrf.mxu3  ;;  %v763_v62 = vsel %vm266_vm8, %v731_v57, 0.0 }
 0x1e9   :  { %v519_v18 = vpop.f32.mrf.mxu0  ;;  %v1356_v46 = vadd.f32 0.05, %v546_v16  ;;  %v539_v38 = vpop.f32.mrf.mxu1  ;;  %v1367_v1 = vadd.f32 0.05, %v571_v17  ;;  %v764_v17 = vadd.f32 %v763_v62, %v762_v58 }
 0x1ea   :  { %v520_v39 = vadd.f32 0.05, %v519_v18  ;;  %v1387_v18 = vsel %vm266_vm8, %v602_v45, 0.0  ;;  %v1398_v33 = vadd.f32 0.05, %v539_v38 }
 0x1eb   :  { %v607_v8 = vmax.f32 %v1356_v46, 0.0  ;;  %v617_v25 = vmax.f32 %v1367_v1, 0.0 }
 0x1ec   :  { %v596_v43 = vmax.f32 %v520_v39, 0.0  ;;  %v604_v46 = vmax.f32 %v1398_v33, 0.0 }
 0x1ed   :  { %vm711_vm2 = vcmp.gt.f32.partialorder %v607_v8, 0.0  ;;  %v1420_v62 = vsel %vm266_vm8, %v607_v8, 0.0  ;;  %v671_v37 = vsel %vm266_vm8, %v617_v25, 0.0 }
 0x1ee   :  { %vm700_vm14 = vcmp.gt.f32.partialorder %v596_v43, 0.0  ;;  %v629_v24 = vsel %vm266_vm8, %v596_v43, 0.0  ;;  %vm1435_vm9 = vcmp.gt.f32.partialorder %v604_v46, 0.0 }
 0x1ef   :  { %v732_v13 = vsel %vm700_vm14, 1.0, %v1090_v14  ;;  %v630_v34 = vadd.f32 %v629_v24, %v628_v11 }
 0x1f0   :  { %v1324_v20 = vpop.f32.mrf.mxu2  ;;  %v1326_v7 = vpop.f32.mrf.mxu3  ;;  %v765_v28 = vsel %vm266_vm8, %v732_v13, 0.0 }
 0x1f1   :  { %v521_v21 = vpop.f32.mrf.mxu0  ;;  %v550_v29 = vadd.f32 0.05, %v1324_v20  ;;  %v541_v39 = vpop.f32.mrf.mxu1  ;;  %v743_v20 = vsel %vm711_vm2, 1.0, %v1090_v14 }
 0x1f2   :  { %v522_v47 = vadd.f32 0.05, %v521_v21  ;;  %v603_v21 = vmax.f32 %v537_v61, 0.0  ;;  %v542_v49 = vadd.f32 0.05, %v541_v39  ;;  %v1425_v13 = vsel %vm266_vm8, %v743_v20, 0.0 }
 0x1f3   :  { %v608_v43 = vmax.f32 %v550_v29, 0.0 }
 0x1f4   :  { %v597_v50 = vmax.f32 %v522_v47, 0.0  ;;  %v1402_v41 = vsel %vm266_vm8, %v603_v21, 0.0  ;;  %vm1404_vm5 = vcmp.gt.f32.partialorder %v603_v21, 0.0  ;;  %v766_v47 = vadd.f32 %v765_v28, %v764_v17 }
 0x1f5   :  { %vm1430_vm7 = vcmp.gt.f32.partialorder %v608_v43, 0.0  ;;  %v653_v20 = vsel %vm266_vm8, %v608_v43, 0.0 }
 0x1f6   :  { %vm701_vm15 = vcmp.gt.f32.partialorder %v597_v50, 0.0  ;;  %v631_v31 = vsel %vm266_vm8, %v597_v50, 0.0 }
 0x1f8   :  { %v1340_v27 = vpop.f32.mrf.mxu2  ;;  %v1342_v36 = vpop.f32.mrf.mxu3 }
 0x1f9   :  { %v524_v30 = vpop.f32.mrf.mxu0 }
 0x1fa   :  { %v525_v55 = vadd.f32 0.05, %v524_v30  ;;  %v733_v30 = vsel %vm701_vm15, 1.0, %v1090_v14 }
 0x1fb   :  { %v767_v44 = vsel %vm266_vm8, %v733_v30, 0.0  ;;  %v605_v30 = vmax.f32 %v542_v49, 0.0 }
 0x1fc   :  { %v598_v63 = vmax.f32 %v525_v55, 0.0  ;;  %v768_v50 = vadd.f32 %v767_v44, %v766_v47  ;;  %v744_v44 = vsel %vm1430_vm7, 1.0, %v1090_v14 }
 0x1fd   :  { %vm1455_vm11 = vcmp.gt.f32.partialorder %v605_v30, 0.0 }
 0x1fe   :  { %vm702_vm1 = vcmp.gt.f32.partialorder %v598_v63, 0.0  ;;  %v633_v45 = vsel %vm266_vm8, %v598_v63, 0.0 }
 0x1ff   :  { %v734_v35 = vsel %vm702_vm1, 1.0, %v1090_v14  ;;  %vm1522_vm1 = vcmp.gt.f32.partialorder %v617_v25, 0.0 }
 0x200   :  { %v1347_v51 = vpop.f32.mrf.mxu2  ;;  %v1363_v59 = vpop.f32.mrf.mxu3  ;;  %v769_v56 = vsel %vm266_vm8, %v734_v35, 0.0 }
 0x201   :  { %v526_v52 = vpop.f32.mrf.mxu0 }
 0x202   :  { %v527_v12 = vadd.f32 0.05, %v526_v52  ;;  %v632_v52 = vadd.f32 %v631_v31, %v630_v34  ;;  %v555_v31 = vadd.f32 0.05, %v1347_v51  ;;  %v1443_v34 = vadd.f32 0.05, %v1326_v7 }
 0x203   :  { %v740_v51 = vsel %vm1435_vm9, 1.0, %v1090_v14 }
 0x204   :  { %v599_v15 = vmax.f32 %v527_v12, 0.0  ;;  %v552_v12 = vadd.f32 0.05, %v1340_v27  ;;  %v634_v58 = vadd.f32 %v633_v45, %v632_v52  ;;  %v739_v27 = vsel %vm1404_vm5, 1.0, %v1090_v14 }
 0x206   :  { %vm703_vm4 = vcmp.gt.f32.partialorder %v599_v15, 0.0  ;;  %v635_v57 = vsel %vm266_vm8, %v599_v15, 0.0  ;;  %v770_v15 = vadd.f32 %v769_v56, %v768_v50  ;;  %v610_v56 = vmax.f32 %v555_v31, 0.0 }
 0x207   :  { %v735_v54 = vsel %vm703_vm4, 1.0, %v1090_v14  ;;  %v636_v17 = vadd.f32 %v635_v57, %v634_v58  ;;  %v848_v50 = vadd.f32 1.0, %v1381_v10  ;;  %v645_v58 = vsel %vm266_vm8, %v604_v46, 0.0 }
 0x208   :  { %v1384_v16 = vpop.f32.mrf.mxu2  ;;  %v1412_v55 = vpop.f32.mrf.mxu3  ;;  %v771_v63 = vsel %vm266_vm8, %v735_v54, 0.0  ;;  %vm714_vm12 = vcmp.gt.f32.partialorder %v610_v56, 0.0 }
 0x209   :  { %v529_v23 = vpop.f32.mrf.mxu0  ;;  %v772_v28 = vadd.f32 %v771_v63, %v770_v15  ;;  %v557_v57 = vadd.f32 0.05, %v1384_v16  ;;  %v781_v63 = vsel %vm266_vm8, %v740_v51, 0.0  ;;  %1059 = vlog2.f32 %v848_v50 }
 0x20a   :  { %v530_v26 = vadd.f32 0.05, %v529_v23  ;;  %v657_v23 = vsel %vm266_vm8, %v610_v56, 0.0 }
 0x20b   :  { %v611_v46 = vmax.f32 %v557_v57, 0.0 }
 0x20c   :  { %v600_v32 = vmax.f32 %v530_v26, 0.0  ;;  %v609_v26 = vmax.f32 %v552_v12, 0.0  ;;  %v789_v12 = vsel %vm266_vm8, %v744_v44, 0.0  ;;  %v854_v44 = vand.u32 2147483647, %v1381_v10 }
 0x20d   :  { %vm1484_vm13 = vcmp.gt.f32.partialorder %v611_v46, 0.0 }
 0x20e   :  { %vm704_vm6 = vcmp.gt.f32.partialorder %v600_v32, 0.0  ;;  %v637_v0 = vsel %vm266_vm8, %v600_v32, 0.0  ;;  %v779_v32 = vsel %vm266_vm8, %v739_v27, 0.0  ;;  %vm713_vm10 = vcmp.gt.f32.partialorder %v609_v26, 0.0 }
 0x20f   :  { %v736_v60 = vsel %vm704_vm6, 1.0, %v1090_v14  ;;  %v638_v29 = vadd.f32 %v637_v0, %v636_v17  ;;  %v857_v0 = vadd.f32 1.0, %v1369_v3  ;;  %v655_v17 = vsel %vm266_vm8, %v609_v26, 0.0 }
 0x210   :  { %v559_v38 = vpop.f32.mrf.mxu2  ;;  %v773_v8 = vsel %vm266_vm8, %v736_v60, 0.0  ;;  %v1459_v43 = vpop.f32.mrf.mxu3  ;;  %vm1502_vm15 = vcmp.lt.f32.partialorder %v854_v44, 0.0004427343 }
 0x211   :  { %v531_v61 = vpop.f32.mrf.mxu0  ;;  %v774_v35 = vadd.f32 %v773_v8, %v772_v28  ;;  %v1462_v49 = vadd.f32 0.05, %v559_v38  ;;  %v647_v38 = vsel %vm266_vm8, %v605_v30, 0.0  ;;  %1061 = vlog2.f32 %v857_v0 }
 0x212   :  { %v532_v11 = vadd.f32 0.05, %v531_v61  ;;  %v745_v61 = vsel %vm713_vm10, 1.0, %v1090_v14  ;;  %v746_v30 = vsel %vm714_vm12, 1.0, %v1090_v14 }
 0x213   :  { %v791_v27 = vsel %vm266_vm8, %v745_v61, 0.0 }
 0x214   :  { %v601_v24 = vmax.f32 %v532_v11, 0.0  ;;  %v741_v11 = vsel %vm1455_vm11, 1.0, %v1090_v14 }
 0x216   :  { %v639_v33 = vsel %vm266_vm8, %v601_v24, 0.0  ;;  %vm705_vm0 = vcmp.gt.f32.partialorder %v601_v24, 0.0  ;;  %v783_v24 = vsel %vm266_vm8, %v741_v11, 0.0  ;;  %v863_v11 = vand.u32 2147483647, %v1369_v3 }
 0x217   :  { %v640_v42 = vadd.f32 %v639_v33, %v638_v29  ;;  %v737_v39 = vsel %vm705_vm0, 1.0, %v1090_v14 }
 0x218   :  { %v775_v45 = vsel %vm266_vm8, %v737_v39, 0.0  ;;  %v561_v47 = vpop.f32.mrf.mxu2  ;;  %v834_v39 = vmax.f32 %v1336_v4, 0.0  ;;  %v793_v4 = vsel %vm266_vm8, %v746_v30, 0.0  ;;  %vm1531_vm4 = vcmp.lt.f32.partialorder %v863_v11, 0.0004427343 }
 0x219   :  { %v642_v7 = vadd.f32 %v1387_v18, %v640_v42  ;;  %v776_v52 = vadd.f32 %v775_v45, %v774_v35  ;;  %v562_v33 = vadd.f32 0.05, %v561_v47  ;;  %v1060_v35 = vpop.eup %1059 }
 0x21a   :  { %v850_v56 = vmul.f32 0.6931472, %v1060_v35  ;;  %v1062_v50 = vpop.eup %1061 }
 0x21b   :  { %v778_v18 = vadd.f32 %v1390_v19, %v776_v52  ;;  %v644_v60 = vadd.f32 %v1402_v41, %v642_v7  ;;  %v612_v19 = vmax.f32 %v1462_v49, 0.0  ;;  %v851_v41 = vmul.f32 -0.5, %v1381_v10 }
 0x21c   :  { %v860_v7 = vmul.f32 -0.5, %v1369_v3  ;;  %v837_v52 = vmul.f32 %v1331_v22, %v1132_v2  ;;  %v613_v49 = vmax.f32 %v562_v33, 0.0  ;;  %v835_v2 = vmax.f32 %v1331_v22, 0.0 }
 0x21d   :  { %v646_v16 = vadd.f32 %v645_v58, %v644_v60  ;;  %v780_v15 = vadd.f32 %v779_v32, %v778_v18  ;;  %v852_v29 = vadd.f32 1.0, %v851_v41  ;;  %vm1488_vm14 = vcmp.gt.f32.partialorder %v612_v19, 0.0 }
 0x21e   :  { %v747_v58 = vsel %vm1484_vm13, 1.0, %v1090_v14  ;;  %v838_v18 = vsub.f32 %v834_v39, %v1351_v53  ;;  %v748_v60 = vsel %vm1488_vm14, 1.0, %v1090_v14  ;;  %vm1526_vm2 = vcmp.gt.f32.partialorder %v613_v49, 0.0 }
 0x21f   :  { %v648_v21 = vadd.f32 %v647_v38, %v646_v16  ;;  %v782_v8 = vadd.f32 %v781_v63, %v780_v15  ;;  %v853_v47 = vmul.f32 %v1381_v10, %v852_v29  ;;  %v659_v10 = vsel %vm266_vm8, %v611_v46, 0.0 }
 0x220   :  { %v564_v28 = vpop.f32.mrf.mxu2  ;;  %v859_v16 = vmul.f32 0.6931472, %v1062_v50  ;;  %v861_v38 = vadd.f32 1.0, %v860_v7  ;;  %v839_v41 = vsub.f32 %v835_v2, %v837_v52  ;;  %v661_v30 = vsel %vm266_vm8, %v612_v19, 0.0 }
 0x221   :  { %v650_v31 = vadd.f32 %v1372_v5, %v648_v21  ;;  %v784_v32 = vadd.f32 %v783_v24, %v782_v8  ;;  %v1496_v5 = vpop.f32.mrf.mxu3  ;;  %v565_v54 = vadd.f32 0.05, %v564_v28  ;;  %v1536_v24 = vadd.f32 0.05, %v1342_v36 }
 0x222   :  { %v749_v33 = vsel %vm1526_vm2, 1.0, %v1090_v14  ;;  %v663_v26 = vsel %vm266_vm8, %v613_v49, 0.0  ;;  %v618_v19 = vmax.f32 %v1443_v34, 0.0  ;;  %v582_v34 = vadd.f32 0.05, %v1412_v55 }
 0x223   :  { %v652_v51 = vadd.f32 %v1420_v62, %v650_v31  ;;  %v786_v45 = vadd.f32 %v1375_v6, %v784_v32  ;;  %v614_v63 = vmax.f32 %v565_v54, 0.0  ;;  %v799_v7 = vsel %vm266_vm8, %v749_v33, 0.0 }
 0x224   :  { %vm722_vm7 = vcmp.gt.f32.partialorder %v618_v19, 0.0  ;;  %v753_v2 = vsel %vm1522_vm1, 1.0, %v1090_v14  ;;  %v673_v22 = vsel %vm266_vm8, %v618_v19, 0.0  ;;  %vm883_vm14 = vcmp.eq.s32.totalorder %v1205_v40, 1 }
 0x225   :  { %v654_v62 = vadd.f32 %v653_v20, %v652_v51  ;;  %v788_v6 = vadd.f32 %v1425_v13, %v786_v45  ;;  %v856_v13 = vsel %vm1502_vm15, %v853_v47, %v850_v56  ;;  %vm718_vm5 = vcmp.gt.f32.partialorder %v614_v63, 0.0 }
 0x226   :  { %v866_v8 = vadd.f32 %v856_v13, %v838_v18  ;;  %v750_v45 = vsel %vm718_vm5, 1.0, %v1090_v14  ;;  %v580_v47 = vadd.f32 0.05, %v1363_v59  ;;  %v665_v52 = vsel %vm266_vm8, %v614_v63, 0.0 }
 0x227   :  { %v656_v61 = vadd.f32 %v655_v17, %v654_v62  ;;  %v790_v20 = vadd.f32 %v789_v12, %v788_v6  ;;  %v862_v17 = vmul.f32 %v1369_v3, %v861_v38  ;;  %v797_v3 = vsel %vm266_vm8, %v748_v60, 0.0 }
 0x228   :  { %v566_v0 = vpop.f32.mrf.mxu2  ;;  %v868_v39 = vsel %vm59_vm3, %v866_v8, 0.0  ;;  %v619_v6 = vmax.f32 %v1536_v24, 0.0  ;;  %v801_v49 = vsel %vm266_vm8, %v750_v45, 0.0  ;;  %v669_v59 = vsel %vm266_vm8, %v616_v48, 0.0 }
 0x229   :  { %v792_v53 = vadd.f32 %v791_v27, %v790_v20  ;;  %v658_v15 = vadd.f32 %v657_v23, %v656_v61  ;;  %v567_v12 = vadd.f32 0.05, %v566_v0  ;;  %v795_v23 = vsel %vm266_vm8, %v747_v58, 0.0  ;;  %v589_v35 = vpop.f32.mrf.mxu3 }
 0x22a   :  { %v865_v31 = vsel %vm1531_vm4, %v862_v17, %v859_v16  ;;  %v620_v18 = vmax.f32 %v580_v47, 0.0  ;;  %v585_v60 = vadd.f32 0.05, %v1459_v43  ;;  %v805_v61 = vsel %vm266_vm8, %v1379_v9, 0.0 }
 0x22b   :  { %v660_v28 = vadd.f32 %v659_v10, %v658_v15  ;;  %v794_v29 = vadd.f32 %v793_v4, %v792_v53  ;;  %v615_v27 = vmax.f32 %v567_v12, 0.0  ;;  %v867_v42 = vadd.f32 %v865_v31, %v839_v41 }
 0x22c   :  { %v754_v13 = vsel %vm722_vm7, 1.0, %v1090_v14  ;;  %v621_v63 = vmax.f32 %v582_v34, 0.0  ;;  %v587_v0 = vadd.f32 0.05, %v1496_v5  ;;  %v807_v16 = vsel %vm266_vm8, %v753_v2, 0.0 }
 0x22d   :  { %v662_v32 = vadd.f32 %v661_v30, %v660_v28  ;;  %v796_v36 = vadd.f32 %v795_v23, %v794_v29  ;;  %vm719_vm6 = vcmp.gt.f32.partialorder %v615_v27, 0.0  ;;  %v869_v54 = vsel %vm59_vm3, %v867_v42, 0.0 }
 0x22e   :  { %v751_v4 = vsel %vm719_vm6, 1.0, %v1090_v14  ;;  %v870_v62 = vadd.f32 %v869_v54, %v868_v39  ;;  %v667_v50 = vsel %vm266_vm8, %v615_v27, 0.0  ;;  %vm723_vm3 = vcmp.gt.f32.partialorder %v619_v6, 0.0 }
 0x22f   :  { %v664_v44 = vadd.f32 %v663_v26, %v662_v32  ;;  %v798_v51 = vadd.f32 %v797_v3, %v796_v36  ;;  %v803_v55 = vsel %vm266_vm8, %v751_v4, 0.0  ;;  %vm724_vm9 = vcmp.gt.f32.partialorder %v620_v18, 0.0 }
 0x230   :  { %871 = vadd.xlane.f32.xlu2 %v870_v62  ;;  %v622_v9 = vmax.f32 %v585_v60, 0.0  ;;  %v590_v1 = vadd.f32 0.05, %v589_v35  ;;  %v809_v25 = vsel %vm266_vm8, %v754_v13, 0.0  ;;  %v755_v53 = vsel %vm723_vm3, 1.0, %v1090_v14 }
 0x231   :  { %v800_v56 = vadd.f32 %v799_v7, %v798_v51  ;;  %v666_v57 = vadd.f32 %v665_v52, %v664_v44  ;;  %v591_v11 = vpop.f32.mrf.mxu3  ;;  %v675_v12 = vsel %vm266_vm8, %v619_v6, 0.0  ;;  %vm725_vm0 = vcmp.gt.f32.partialorder %v621_v63, 0.0 }
 0x232   :  { %v623_v5 = vmax.f32 %v587_v0, 0.0  ;;  %v592_v41 = vadd.f32 0.05, %v591_v11  ;;  %v756_v17 = vsel %vm724_vm9, 1.0, %v1090_v14  ;;  %v811_v24 = vsel %vm266_vm8, %v755_v53, 0.0 }
 0x233   :  { %v802_v10 = vadd.f32 %v801_v49, %v800_v56  ;;  %v668_v58 = vadd.f32 %v667_v50, %v666_v57  ;;  %v677_v28 = vsel %vm266_vm8, %v620_v18, 0.0  ;;  %vm726_vm10 = vcmp.gt.f32.partialorder %v622_v9, 0.0 }
 0x234   :  { %v624_v29 = vmax.f32 %v590_v1, 0.0  ;;  %v757_v27 = vsel %vm725_vm0, 1.0, %v1090_v14  ;;  %v813_v31 = vsel %vm266_vm8, %v756_v17, 0.0  ;;  %v679_v3 = vsel %vm266_vm8, %v621_v63, 0.0 }
 0x235   :  { %v670_v48 = vadd.f32 %v669_v59, %v668_v58  ;;  %v804_v20 = vadd.f32 %v803_v55, %v802_v10  ;;  %vm727_vm11 = vcmp.gt.f32.partialorder %v623_v5, 0.0  ;;  %v625_v32 = vmax.f32 %v592_v41, 0.0 }
 0x236   :  { %v758_v33 = vsel %vm726_vm10, 1.0, %v1090_v14  ;;  %v815_v26 = vsel %vm266_vm8, %v757_v27, 0.0  ;;  %v681_v42 = vsel %vm266_vm8, %v622_v9, 0.0  ;;  %vm728_vm12 = vcmp.gt.f32.partialorder %v624_v29, 0.0 }
 0x237   :  { %v672_v43 = vadd.f32 %v671_v37, %v670_v48  ;;  %v806_v38 = vadd.f32 %v805_v61, %v804_v20  ;;  %v759_v19 = vsel %vm727_vm11, 1.0, %v1090_v14  ;;  %v817_v51 = vsel %vm266_vm8, %v758_v33, 0.0 }
 0x238   :  { %v683_v45 = vsel %vm266_vm8, %v623_v5, 0.0  ;;  %vm729_vm13 = vcmp.gt.f32.partialorder %v625_v32, 0.0  ;;  %v760_v7 = vsel %vm728_vm12, 1.0, %v1090_v14  ;;  %v819_v54 = vsel %vm266_vm8, %v759_v19, 0.0 }
 0x239   :  { %v674_v15 = vadd.f32 %v673_v22, %v672_v43  ;;  %v808_v46 = vadd.f32 %v807_v16, %v806_v38  ;;  %v685_v56 = vsel %vm266_vm8, %v624_v29, 0.0  ;;  %v761_v57 = vsel %vm729_vm13, 1.0, %v1090_v14 }
 0x23a   :  { %v687_v6 = vsel %vm266_vm8, %v625_v32, 0.0  ;;  %v821_v34 = vsel %vm266_vm8, %v760_v7, 0.0  ;;  %v823_v59 = vsel %vm266_vm8, %v761_v57, 0.0  ;;  %vm880_vm8 = vcmp.eq.s32.totalorder %v1205_v40, 0 }
 0x23b   :  { %v676_v21 = vadd.f32 %v675_v12, %v674_v15  ;;  %v810_v8 = vadd.f32 %v809_v25, %v808_v46  ;;  %v881_v53 = vstv %s1026_s2  ;;  %v884_v15 = vstv %s1028_s7 }
 0x23c   :  { %v882_v46 = vsel %vm880_vm8, %v881_v53, 0.0  ;;  %v885_v12 = vsel %vm883_vm14, %v884_v15, 0.0  ;;  %vm887_vm15 = vcmp.eq.s32.totalorder %v1205_v40, 2  ;;  %vm891_vm1 = vcmp.eq.s32.totalorder %v1205_v40, 3 }
 0x23d   :  { %v812_v23 = vadd.f32 %v811_v24, %v810_v8  ;;  %v678_v30 = vadd.f32 %v677_v28, %v676_v21  ;;  %v886_v5 = vadd.f32 %v885_v12, %v882_v46  ;;  %vm895_vm2 = vcmp.eq.s32.totalorder %v1205_v40, 4 }
 0x23f   :  { %v680_v36 = vadd.f32 %v679_v3, %v678_v30  ;;  %v814_v35 = vadd.f32 %v813_v31, %v812_v23 }
 0x241   :  { %v682_v39 = vadd.f32 %v681_v42, %v680_v36  ;;  %v816_v44 = vadd.f32 %v815_v26, %v814_v35 }
 0x243   :  { %v684_v47 = vadd.f32 %v683_v45, %v682_v39  ;;  %v818_v52 = vadd.f32 %v817_v51, %v816_v44 }
 0x245   :  { %v686_v4 = vadd.f32 %v685_v56, %v684_v47  ;;  %v820_v62 = vadd.f32 %v819_v54, %v818_v52 }
 0x247   :  { %v688_v49 = vadd.f32 %v687_v6, %v686_v4  ;;  %v822_v50 = vadd.f32 %v821_v34, %v820_v62 }
 0x249   :  { %689 = vadd.xlane.f32.xlu0 %v688_v49  ;;  %v824_v10 = vadd.f32 %v823_v59, %v822_v50 }
 0x24b   :  { %825 = vadd.xlane.f32.xlu1 %v824_v10 }
 0x2a3   :  { %v872_v58 = vpop.xlane.xlu2 %871 }
 0x2a4   :  { %v873_v2 = vrot.slane %v872_v58, 4 }
 0x2a6   :  { %v874_v18 = vadd.f32 %v873_v2, %v872_v58 }
 0x2a8   :  { %v875_v61 = vrot.slane %v874_v18, 2 }
 0x2aa   :  { %v876_v63 = vadd.f32 %v875_v61, %v874_v18 }
 0x2ac   :  { %v877_v11 = vrot.slane %v876_v63, 1 }
 0x2ae   :  { %v878_v25 = vadd.f32 %v877_v11, %v876_v63 }
 0x2bc   :  { %v690_v60 = vpop.xlane.xlu0 %689 }
 0x2bd   :  { %v691_v55 = vrot.slane %v690_v60, 4 }
 0x2be   :  { %v826_v14 = vpop.xlane.xlu1 %825 }
 0x2bf   :  { %v692_v37 = vadd.f32 %v691_v55, %v690_v60  ;;  %v827_v48 = vrot.slane %v826_v14, 4 }
 0x2c1   :  { %v693_v20 = vrot.slane %v692_v37, 2  ;;  %v828_v13 = vadd.f32 %v827_v48, %v826_v14 }
 0x2c3   :  { %v694_v0 = vadd.f32 %v693_v20, %v692_v37  ;;  %v829_v16 = vrot.slane %v828_v13, 2 }
 0x2c5   :  { %v830_v43 = vadd.f32 %v829_v16, %v828_v13  ;;  %v695_v38 = vrot.slane %v694_v0, 1 }
 0x2c7   :  { %v696_v22 = vadd.f32 %v695_v38, %v694_v0  ;;  %v831_v9 = vrot.slane %v830_v43, 1 }
 0x2c9   :  { %1029 = vpush %v696_v22  ;;  %v832_v1 = vadd.f32 %v831_v9, %v830_v43 }
 0x2cb   :  { %1031 = vpush %v832_v1 }
 0x2cc   :  { %1033 = vpush %v878_v25 }
 0x2fa   :  { %s1030_s8 = spop %1029 }
 0x2fb   :  { %v888_v41 = vstv %s1030_s8 }
 0x2fc   :  { %v889_v17 = vsel %vm887_vm15, %v888_v41, 0.0  ;;  %s1032_s9 = spop %1031 }
 0x2fd   :  { %v890_v21 = vadd.f32 %v889_v17, %v886_v5  ;;  %v892_v8 = vstv %s1032_s9  ;;  %s1034_s10 = spop %1033 }
 0x2fe   :  { %v893_v24 = vsel %vm891_vm1, %v892_v8, 0.0  ;;  %v896_v28 = vstv %s1034_s10 }
 0x2ff   :  { %v894_v29 = vadd.f32 %v893_v24, %v890_v21  ;;  %v897_v27 = vsel %vm895_vm2, %v896_v28, 0.0 }
 0x301   :  { %v898_v23 = vadd.f32 %v897_v27, %v894_v29 }
 0x303   :  { %899 = vst [vmem:[#allocation2] sm:$0xff] %v898_v23 }
 0x304   :  { %910 = dma.vmem_to_hbm [thread:$0]  %s906_s12, 128, %s908_s15, [#allocation3]  }
 0x305   :  { %1087 = dma.done.wait [#allocation3], 128  }
 0x306   :  { %1088 = vsyncadd [#allocation3], 4294967168 }
 0x307   :  { %915 = vsyncpa [#allocation3], 1 }

</bundles_post_ra>
